<compile_context>
chip_gen: v7x
topology: tpu7x:2x2x1
jax: 0.10.0
libtpu: 0.0.40
codegen_flags: <defaults>
</compile_context>

<pallas_src>
import functools

import jax
import jax.numpy as jnp
from jax import lax
from jax.experimental import pallas as pl
from jax.experimental.pallas import tpu as pltpu


def _round_up(x: int, m: int) -> int:
    return ((x + m - 1) // m) * m


def _cdiv(a: int, b: int) -> int:
    return -(-a // b)


@functools.lru_cache(maxsize=None)
def _tpu_topology():
    """(vmem_capacity_bytes, num_tensorcores) with conservative fallbacks."""
    vmem_cap = 64 * 2**20          # v7x-safe fallback
    num_cores = 1                  # single-TC fallback (v5e/v6e behaviour)
    try:
        info = pltpu.get_tpu_info()
        vmem_cap = int(getattr(info, "vmem_capacity_bytes", vmem_cap))
        for attr in ("num_cores", "core_count", "num_tensorcores", "tensorcore_count"):
            v = getattr(info, attr, None)
            if v:
                num_cores = int(v)
                break
    except Exception:
        pass
    return vmem_cap, num_cores


# ----------------------------------------------------------------------------
# Kernel
# ----------------------------------------------------------------------------
def _make_policy_kernel(n_hidden: int, act_dim: int):
    """Kernel for a fixed number of hidden (Linear+Tanh) layers + fused head."""

    def kernel(x_ref, *refs):
        # refs = (W1, b1, ..., Wn, bn, W_head, b_head, out_ref)
        out_ref = refs[-1]
        params = refs[:-1]

        h = x_ref[...]                                  # (tb, feat) f32 from HBM

        for layer in range(n_hidden):
            w = params[2 * layer][...]                  # (in, out_pad) compute dtype
            b = params[2 * layer + 1][...]              # (1, out_pad)  f32
            # cast to the MXU operand dtype in-kernel (bf16 by default)
            z = jnp.dot(h.astype(w.dtype), w,
                        preferred_element_type=jnp.float32) + b
            h = jnp.tanh(z)                             # f32 (EUP)

        w_head = params[2 * n_hidden][...]              # (H_pad, 2*act_dim)
        b_head = params[2 * n_hidden + 1][...]          # (1, 2*act_dim) f32
        z = jnp.dot(h.astype(w_head.dtype), w_head,
                    preferred_element_type=jnp.float32) + b_head

        # Fused head layout: lanes [0, A) = mean, [A, 2A) = pre-std.
        col = lax.broadcasted_iota(jnp.int32, z.shape, 1)
        is_std = col >= act_dim

        # softplus (matches torch.nn.functional.softplus, beta=1, threshold=20)
        sp = jnp.where(z > 20.0, z, jnp.log1p(jnp.exp(jnp.minimum(z, 20.0))))

        out_ref[...] = jnp.where(is_std, sp, z).astype(out_ref.dtype)

    return kernel


# ----------------------------------------------------------------------------
# Parameter init / packing
# ----------------------------------------------------------------------------
def init_params(key, mlp_layers):
    """Deterministic init mirroring nn.Linear shapes (weights stored as (in, out))."""
    params = []
    sizes = list(zip(mlp_layers[:-2], mlp_layers[1:-1]))  # hidden layers
    heads = [(mlp_layers[-2], mlp_layers[-1]), (mlp_layers[-2], mlp_layers[-1])]
    for fan_in, fan_out in sizes + heads:
        key, kw, kb = jax.random.split(key, 3)
        bound = 1.0 / jnp.sqrt(float(fan_in))
        w = jax.random.uniform(kw, (fan_in, fan_out), jnp.float32, -bound, bound)
        b = jax.random.uniform(kb, (1, fan_out), jnp.float32, -bound, bound)
        params.append((w, b))
    return params  # [hidden_0, ..., hidden_{n-1}, head_mean, head_std]


def pack_params(params, compute_dtype=jnp.bfloat16):
    """Pack params for the kernel.

    - hidden weights cast to `compute_dtype`; biases stay f32.
    - first-layer rows keep the TRUE feature width (x is fed unpadded/uncast).
    - hidden output widths zero-padded to multiples of 128 lanes (tanh(0)=0 -> exact).
    - mean/std heads fused into one (H_pad, 2*act_dim) weight / (1, 2*act_dim) bias
      (narrow head -> narrow output slab).
    Returns (packed_tuple, act_dim).
    """
    hidden = params[:-2]
    (w_mean, b_mean), (w_std, b_std) = params[-2], params[-1]
    act_dim = w_mean.shape[1]

    packed = []
    prev_pad = hidden[0][0].shape[0] if hidden else w_mean.shape[0]  # true feat width
    for (w, b) in hidden:
        fan_in, fan_out = w.shape
        out_pad = _round_up(fan_out, 128)
        w_p = jnp.zeros((prev_pad, out_pad), jnp.float32).at[:fan_in, :fan_out].set(w)
        b_p = jnp.zeros((1, out_pad), jnp.float32).at[:, :fan_out].set(b.reshape(1, -1))
        packed.append(jnp.asarray(w_p, compute_dtype))
        packed.append(b_p)
        prev_pad = out_pad

    # fused head (mean | std): exactly 2*act_dim columns
    w_head = jnp.zeros((prev_pad, 2 * act_dim), jnp.float32)
    w_head = w_head.at[:w_mean.shape[0], :act_dim].set(w_mean)
    w_head = w_head.at[:w_std.shape[0], act_dim:].set(w_std)
    b_head = jnp.concatenate([b_mean.reshape(1, -1), b_std.reshape(1, -1)], axis=1)
    packed.append(jnp.asarray(w_head, compute_dtype))
    packed.append(jnp.asarray(b_head, jnp.float32))
    return tuple(packed), act_dim


# ----------------------------------------------------------------------------
# Wrapper
# ----------------------------------------------------------------------------
@functools.partial(jax.jit, static_argnames=("act_dim", "max_batch_tile"))
def continuous_policy_mlp(x, packed_params, *, act_dim, max_batch_tile=8192):
    """x: (B, ...) -> flattened to (B, F).  Returns (mean, std), each (B, A) f32."""
    b = x.shape[0]
    x2d = x.reshape(b, -1)                 # Flatten (free in XLA)
    feat = x2d.shape[1]

    n_hidden = (len(packed_params) - 2) // 2
    assert packed_params[0].shape[0] == feat, "packed params do not match x features"
    head_w = packed_params[-2].shape[1]    # = 2 * act_dim
    assert head_w == 2 * act_dim
    cbytes = jnp.dtype(packed_params[0].dtype).itemsize
    hidden_widths = [packed_params[2 * l].shape[1] for l in range(n_hidden)]

    # --- VMEM accounting ------------------------------------------------------
    # Per-batch-row bytes: double-buffered I/O blocks + conservative allowance for
    # in-kernel intermediates (f32 z + tanh output + compute-dtype casts).
    per_row = (2 * feat * 4                                   # x block (f32, x2 bufs)
               + 2 * head_w * 4                               # out block (f32, x2 bufs)
               + feat * cbytes                                # x cast to compute dtype
               + sum(hw * (8 + cbytes) for hw in hidden_widths)
               + 4 * head_w * 4)                              # head z / softplus temps
    param_bytes = sum(int(p.size) * jnp.dtype(p.dtype).itemsize for p in packed_params)

    vmem_cap, num_cores = _tpu_topology()
    budget = (3 * vmem_cap) // 4           # ~48 MiB on v7x, ~96 MiB on v5e/v6e
    avail = budget - 2 * param_bytes - (2 << 20)   # resident params (x2 bufs) + margin
    tb_cap = max(8, (avail // per_row) // 8 * 8)

    # --- batch tile selection -------------------------------------------------
    # max_batch_tile bounds unrolled code size / compile time; VMEM cap bounds memory.
    tb = min(_round_up(b, 8), int(max_batch_tile), tb_cap)
    tb = max(8, (tb // 8) * 8)

    # Multi-TensorCore chips (v7x): ensure >= num_cores grid steps so the "parallel"
    # axis can shard across cores.  Skipped on single-TC v5e/v6e (pure overhead).
    if num_cores > 1 and b >= num_cores * 8 and _cdiv(b, tb) < num_cores:
        tb = max(8, _round_up(_cdiv(b, num_cores), 8))

    grid = (_cdiv(b, tb),)                 # trailing block may overrun; Pallas clips

    usage_est = tb * per_row + 2 * param_bytes + (2 << 20)
    vmem_limit = int(min(vmem_cap - (8 << 20),                 # >= 8 MiB headroom
                         max(32 << 20, usage_est + (8 << 20))))

    # --- specs ----------------------------------------------------------------
    # x: unpadded, uncast; last block dim == full feature dim (legal BlockSpec).
    in_specs = [pl.BlockSpec((tb, feat), lambda i: (i, 0))]
    for p in packed_params:
        # Constant index_map: Pallas keeps the block resident (no per-step DMA).
        # (pl.Buffered(1) would drop their second buffer; skipped — params are tiny.)
        in_specs.append(pl.BlockSpec(p.shape, lambda i: (0, 0)))

    out_specs = pl.BlockSpec((tb, head_w), lambda i: (i, 0))
    out_shape = jax.ShapeDtypeStruct((b, head_w), jnp.float32)

    kernel = _make_policy_kernel(n_hidden, act_dim)

    out = pl.pallas_call(
        kernel,
        out_shape=out_shape,
        grid_spec=pltpu.PrefetchScalarGridSpec(
            num_scalar_prefetch=0,
            grid=grid,
            in_specs=in_specs,
            out_specs=out_specs,
        ),
        compiler_params=pltpu.CompilerParams(
            dimension_semantics=("parallel",),
            vmem_limit_bytes=vmem_limit,
        ),
    )(x2d, *packed_params)

    mean = out[:, :act_dim]
    std = out[:, act_dim:]
    return mean, std


# ----------------------------------------------------------------------------
# Pure-JAX reference matching the PyTorch module
# ----------------------------------------------------------------------------
def reference_forward(x, params):
    h = x.reshape(x.shape[0], -1).astype(jnp.float32)
    hidden = params[:-2]
    (w_mean, b_mean), (w_std, b_std) = params[-2], params[-1]
    for w, b in hidden:
        h = jnp.tanh(h @ w + b)
    mean = h @ w_mean + b_mean
    s = h @ w_std + b_std
    std = jnp.where(s > 20.0, s, jnp.log1p(jnp.exp(jnp.minimum(s, 20.0))))
    return mean, std


if __name__ == "__main__":
    # mlp_layers = [obs_dim, hidden, hidden, action_dim]
    mlp_layers = [64, 32, 32, 8]
    batch = 8

    key = jax.random.PRNGKey(0)
    key, kx = jax.random.split(key)
    # Observation: (B, 4, 4, 4) — Flatten() collapses it to (B, 64).
    x = jax.random.normal(kx, (batch, 4, 4, 4), jnp.float32)

    params = init_params(jax.random.PRNGKey(0), mlp_layers)
    ref_mean, ref_std = reference_forward(x, params)

    # f32-operand path: tight check against the reference (zero-padding is exact).
    packed_f32, act_dim = pack_params(params, compute_dtype=jnp.float32)
    mean32, std32 = continuous_policy_mlp(x, packed_f32, act_dim=act_dim)
    jax.block_until_ready((mean32, std32))
    assert mean32.shape == (batch, act_dim) and std32.shape == (batch, act_dim)
    assert jnp.allclose(mean32, ref_mean, atol=1e-5, rtol=1e-5)
    assert jnp.allclose(std32, ref_std, atol=1e-5, rtol=1e-5)

    # bf16-operand path (MXU-native; f32 accumulation) — looser tolerance.
    packed_bf16, _ = pack_params(params, compute_dtype=jnp.bfloat16)
    mean16, std16 = continuous_policy_mlp(x, packed_bf16, act_dim=act_dim)
    jax.block_until_ready((mean16, std16))
    assert jnp.allclose(mean16, ref_mean, atol=3e-2, rtol=3e-2)
    assert jnp.allclose(std16, ref_std, atol=3e-2, rtol=3e-2)
    assert bool(jnp.all(std32 >= 0.0)) and bool(jnp.all(std16 >= 0.0))
    assert bool(jnp.all(jnp.isfinite(mean16))) and bool(jnp.all(jnp.isfinite(std16)))

    # Ragged batch (not a multiple of 8) exercises Pallas trailing-block handling.
    x_odd = jax.random.normal(key, (5, 4, 4, 4), jnp.float32)
    m_odd, s_odd = continuous_policy_mlp(x_odd, packed_bf16, act_dim=act_dim)
    jax.block_until_ready((m_odd, s_odd))
    rm_odd, rs_odd = reference_forward(x_odd, params)
    assert m_odd.shape == (5, act_dim) and s_odd.shape == (5, act_dim)
    assert jnp.allclose(m_odd, rm_odd, atol=3e-2, rtol=3e-2)
    assert jnp.allclose(s_odd, rs_odd, atol=3e-2, rtol=3e-2)

    print("KERNEL_OK")
</pallas_src>

<mosaic_0001>
module attributes {stable_mosaic.version = 11 : i64} {
  func.func @kernel(%arg0: i32, %arg1: memref<8x64xf32, #tpu.memory_space<vmem>>, %arg2: memref<64x128xf32, #tpu.memory_space<vmem>>, %arg3: memref<1x128xf32, #tpu.memory_space<vmem>>, %arg4: memref<128x128xf32, #tpu.memory_space<vmem>>, %arg5: memref<1x128xf32, #tpu.memory_space<vmem>>, %arg6: memref<128x16xf32, #tpu.memory_space<vmem>>, %arg7: memref<1x16xf32, #tpu.memory_space<vmem>>, %arg8: memref<8x16xf32, #tpu.memory_space<vmem>>) attributes {dimension_semantics = [#tpu.dimension_semantics<parallel>], iteration_bounds = array<i64: 1>, scalar_prefetch = 0 : i64, scratch_operands = 0 : i64, tpu.core_type = #tpu.core_type<tc>, window_params = [{transform_indices = @transform_0, window_bounds = array<i64: 8, 64>}, {pipeline_mode = #tpu.pipeline_mode<synchronous>, transform_indices = @transform_1, window_bounds = array<i64: 64, 128>}, {pipeline_mode = #tpu.pipeline_mode<synchronous>, transform_indices = @transform_2, window_bounds = array<i64: 1, 128>}, {pipeline_mode = #tpu.pipeline_mode<synchronous>, transform_indices = @transform_3, window_bounds = array<i64: 128, 128>}, {pipeline_mode = #tpu.pipeline_mode<synchronous>, transform_indices = @transform_4, window_bounds = array<i64: 1, 128>}, {pipeline_mode = #tpu.pipeline_mode<synchronous>, transform_indices = @transform_5, window_bounds = array<i64: 128, 16>}, {pipeline_mode = #tpu.pipeline_mode<synchronous>, transform_indices = @transform_6, window_bounds = array<i64: 1, 16>}, {transform_indices = @transform_7, window_bounds = array<i64: 8, 16>}]} {
    %c0 = arith.constant 0 : index
    %c0_0 = arith.constant 0 : index
    %0 = vector.load %arg1[%c0, %c0_0] : memref<8x64xf32, #tpu.memory_space<vmem>>, vector<8x64xf32>
    %c0_1 = arith.constant 0 : index
    %c0_2 = arith.constant 0 : index
    %1 = vector.load %arg2[%c0_1, %c0_2] : memref<64x128xf32, #tpu.memory_space<vmem>>, vector<64x128xf32>
    %c0_3 = arith.constant 0 : index
    %c0_4 = arith.constant 0 : index
    %2 = vector.load %arg3[%c0_3, %c0_4] : memref<1x128xf32, #tpu.memory_space<vmem>>, vector<1x128xf32>
    %cst = arith.constant dense<0.000000e+00> : vector<8x128xf32>
    %3 = tpu.matmul %0, %1, %cst {dimension_numbers = #tpu.dot_dimension_numbers<[1], [0], [0], [1], [0, 0, 1, 1], [], []>} : vector<8x64xf32>, vector<64x128xf32>, vector<8x128xf32> -> vector<8x128xf32>
    %4 = vector.broadcast %2 : vector<1x128xf32> to vector<8x128xf32>
    %5 = arith.addf %3, %4 : vector<8x128xf32>
    %6 = math.tanh %5 : vector<8x128xf32>
    %c0_5 = arith.constant 0 : index
    %c0_6 = arith.constant 0 : index
    %7 = vector.load %arg4[%c0_5, %c0_6] : memref<128x128xf32, #tpu.memory_space<vmem>>, vector<128x128xf32>
    %c0_7 = arith.constant 0 : index
    %c0_8 = arith.constant 0 : index
    %8 = vector.load %arg5[%c0_7, %c0_8] : memref<1x128xf32, #tpu.memory_space<vmem>>, vector<1x128xf32>
    %cst_9 = arith.constant dense<0.000000e+00> : vector<8x128xf32>
    %9 = tpu.matmul %6, %7, %cst_9 {dimension_numbers = #tpu.dot_dimension_numbers<[1], [0], [0], [1], [0, 0, 1, 1], [], []>} : vector<8x128xf32>, vector<128x128xf32>, vector<8x128xf32> -> vector<8x128xf32>
    %10 = vector.broadcast %8 : vector<1x128xf32> to vector<8x128xf32>
    %11 = arith.addf %9, %10 : vector<8x128xf32>
    %12 = math.tanh %11 : vector<8x128xf32>
    %c0_10 = arith.constant 0 : index
    %c0_11 = arith.constant 0 : index
    %13 = vector.load %arg6[%c0_10, %c0_11] : memref<128x16xf32, #tpu.memory_space<vmem>>, vector<128x16xf32>
    %c0_12 = arith.constant 0 : index
    %c0_13 = arith.constant 0 : index
    %14 = vector.load %arg7[%c0_12, %c0_13] : memref<1x16xf32, #tpu.memory_space<vmem>>, vector<1x16xf32>
    %cst_14 = arith.constant dense<0.000000e+00> : vector<8x16xf32>
    %15 = tpu.matmul %12, %13, %cst_14 {dimension_numbers = #tpu.dot_dimension_numbers<[1], [0], [0], [1], [0, 0, 1, 1], [], []>} : vector<8x128xf32>, vector<128x16xf32>, vector<8x16xf32> -> vector<8x16xf32>
    %16 = vector.broadcast %14 : vector<1x16xf32> to vector<8x16xf32>
    %17 = arith.addf %15, %16 : vector<8x16xf32>
    %18 = tpu.iota {dimensions = array<i32: 1>} : vector<8x16xi32>
    %c8_i32 = arith.constant 8 : i32
    %19 = vector.broadcast %c8_i32 : i32 to vector<8x16xi32>
    %20 = arith.cmpi sge, %18, %19 : vector<8x16xi32>
    %cst_15 = arith.constant 2.000000e+01 : f32
    %21 = vector.broadcast %cst_15 : f32 to vector<8x16xf32>
    %22 = arith.cmpf ogt, %17, %21 : vector<8x16xf32>
    %cst_16 = arith.constant 2.000000e+01 : f32
    %23 = vector.broadcast %cst_16 : f32 to vector<8x16xf32>
    %24 = arith.minimumf %17, %23 : vector<8x16xf32>
    %25 = math.exp %24 : vector<8x16xf32>
    %26 = math.log1p %25 : vector<8x16xf32>
    %27 = arith.select %22, %17, %26 : vector<8x16xi1>, vector<8x16xf32>
    %28 = arith.select %20, %27, %17 : vector<8x16xi1>, vector<8x16xf32>
    %c0_17 = arith.constant 0 : index
    %c0_18 = arith.constant 0 : index
    %29 = vector.load %arg8[%c0_17, %c0_18] : memref<8x16xf32, #tpu.memory_space<vmem>>, vector<8x16xf32>
    tpu.vector_store %arg8[%c0_17, %c0_18], %28 {strides = array<i32>} : memref<8x16xf32, #tpu.memory_space<vmem>>, vector<8x16xf32>,
    return
  }
  func.func @transform_0(%arg0: i32) -> (i32, i32) {
    %c0_i32 = arith.constant 0 : i32
    %c0_i32_0 = arith.constant 0 : i32
    return %arg0, %c0_i32 : i32, i32
  }
  func.func @transform_1(%arg0: i32) -> (i32, i32) {
    %c0_i32 = arith.constant 0 : i32
    %c0_i32_0 = arith.constant 0 : i32
    %c0_i32_1 = arith.constant 0 : i32
    return %c0_i32, %c0_i32_0 : i32, i32
  }
  func.func @transform_2(%arg0: i32) -> (i32, i32) {
    %c0_i32 = arith.constant 0 : i32
    %c0_i32_0 = arith.constant 0 : i32
    %c0_i32_1 = arith.constant 0 : i32
    return %c0_i32, %c0_i32_0 : i32, i32
  }
  func.func @transform_3(%arg0: i32) -> (i32, i32) {
    %c0_i32 = arith.constant 0 : i32
    %c0_i32_0 = arith.constant 0 : i32
    %c0_i32_1 = arith.constant 0 : i32
    return %c0_i32, %c0_i32_0 : i32, i32
  }
  func.func @transform_4(%arg0: i32) -> (i32, i32) {
    %c0_i32 = arith.constant 0 : i32
    %c0_i32_0 = arith.constant 0 : i32
    %c0_i32_1 = arith.constant 0 : i32
    return %c0_i32, %c0_i32_0 : i32, i32
  }
  func.func @transform_5(%arg0: i32) -> (i32, i32) {
    %c0_i32 = arith.constant 0 : i32
    %c0_i32_0 = arith.constant 0 : i32
    %c0_i32_1 = arith.constant 0 : i32
    return %c0_i32, %c0_i32_0 : i32, i32
  }
  func.func @transform_6(%arg0: i32) -> (i32, i32) {
    %c0_i32 = arith.constant 0 : i32
    %c0_i32_0 = arith.constant 0 : i32
    %c0_i32_1 = arith.constant 0 : i32
    return %c0_i32, %c0_i32_0 : i32, i32
  }
  func.func @transform_7(%arg0: i32) -> (i32, i32) {
    %c0_i32 = arith.constant 0 : i32
    %c0_i32_0 = arith.constant 0 : i32
    return %arg0, %c0_i32 : i32, i32
  }
}

</mosaic_0001>

<bundles_post_ra>
// kernel: continuous_policy_mlp.1
= control target key start
LH: loop header
LB: loop body
LE: loop exit
PB: predicated region body
PF: predicated region fallthrough
CT: control target
= control target key end

     0   :  { %v535_v0 = vmov 0.0|0.0   ;;  %vm536_vm0 = vmmov 0   ;;  %v537_v4 = vmov 0.0   ;;  %vm42_vm1 = vcmask 523264   ;;  %s736_s1 = inlined_call_operand.vmem [shape: f32[64,128], index: 1, kind: input, shape index: {}]   ;;  %s737_s3 = inlined_call_operand.vmem [shape: f32[128,128], index: 3, kind: input, shape index: {}]   ;;  %s738_s0 = inlined_call_operand.vmem [shape: f32[8,64], index: 0, kind: input, shape index: {}]   ;;  %s739_s5 = inlined_call_operand.vmem [shape: f32[128,16], index: 5, kind: input, shape index: {}]   ;;  %s740_s2 = inlined_call_operand.vmem [shape: f32[1,128], index: 2, kind: input, shape index: {}]   ;;  %s741_s4 = inlined_call_operand.vmem [shape: f32[1,128], index: 4, kind: input, shape index: {}]   ;;  %s742_s6 = inlined_call_operand.vmem [shape: f32[1,16], index: 6, kind: input, shape index: {}]   ;;  %s743_s7 = inlined_call_operand.vmem [shape: f32[8,16], index: 7, kind: output, shape index: {}]  }
   0x1   :  { %464 = vmatprep.subr.bf16.mxu0 %v535_v0  ;;  %v27_v1 = vld [vmem:[%s736_s1] sm:$0xff]  ;;  %v28_v2 = vld [vmem:[%s736_s1 + $0x8] sm:$0xff]  ;;  %v29_v3 = vld [vmem:[%s736_s1 + $0x10] sm:$0xff]  ;;  %391 = vmatprep.mubr.msk.f32.mxu0 %vm536_vm0, %v537_v4  ;;  %vm322_vm5 = vcmask 130048  }
   0x2   :  { %v465_v5 = vpack.c.bf16 %v28_v2, %v27_v1  ;;  %v30_v6 = vld [vmem:[%s736_s1 + $0x18] sm:$0xff]  ;;  %476 = vmatprep.subr.bf16.mxu1 %v535_v0  ;;  %426 = vmatprep.mubr.msk.f32.mxu1 %vm536_vm0, %v537_v4  ;;  %v117_v8 = vld [vmem:[%s737_s3] sm:$0xff]  ;;  %v118_v9 = vld [vmem:[%s737_s3 + $0x8] sm:$0xff] }
   0x3   :  { %v468_v7 = vpack.c.bf16 %v30_v6, %v29_v3  ;;  %v119_v10 = vld [vmem:[%s737_s3 + $0x10] sm:$0xff]  ;;  %v31_v11 = vld [vmem:[%s736_s1 + $0x20] sm:$0xff]  ;;  %v32_v12 = vld [vmem:[%s736_s1 + $0x28] sm:$0xff]  ;;  %v477_v13 = vpack.c.bf16 %v118_v9, %v117_v8 }
   0x4   :  { %466 = vmatpush3.bf16.msra.mxu0 %v465_v5  ;;  %v120_v14 = vld [vmem:[%s737_s3 + $0x18] sm:$0xff]  ;;  %v471_v16 = vpack.c.bf16 %v32_v12, %v31_v11  ;;  %v121_v17 = vld [vmem:[%s737_s3 + $0x20] sm:$0xff]  ;;  %v122_v18 = vld [vmem:[%s737_s3 + $0x28] sm:$0xff] }
   0x5   :  { %467 = vmatprep.subr.bf16.mxu0 %v535_v0  ;;  %478 = vmatpush3.bf16.msra.mxu1 %v477_v13  ;;  %v480_v15 = vpack.c.bf16 %v120_v14, %v119_v10  ;;  %v33_v19 = vld [vmem:[%s736_s1 + $0x30] sm:$0xff]  ;;  %v34_v20 = vld [vmem:[%s736_s1 + $0x38] sm:$0xff]  ;;  %v483_v21 = vpack.c.bf16 %v122_v18, %v121_v17  ;;  %v26_v26 = vld [vmem:[%s738_s0] sm:$0xff]  ;;  %v304_v18 = vlaneseq }
   0x6   :  { %479 = vmatprep.subr.bf16.mxu1 %v535_v0  ;;  %v474_v22 = vpack.c.bf16 %v34_v20, %v33_v19  ;;  %v123_v23 = vld [vmem:[%s737_s3 + $0x30] sm:$0xff]  ;;  %v124_v24 = vld [vmem:[%s737_s3 + $0x38] sm:$0xff]  ;;  %v125_v27 = vld [vmem:[%s737_s3 + $0x40] sm:$0xff] }
   0x7   :  { %v486_v25 = vpack.c.bf16 %v124_v24, %v123_v23  ;;  %v126_v28 = vld [vmem:[%s737_s3 + $0x48] sm:$0xff]  ;;  %v127_v30 = vld [vmem:[%s737_s3 + $0x50] sm:$0xff]  ;;  %v128_v31 = vld [vmem:[%s737_s3 + $0x58] sm:$0xff]  ;;  %v305_v20 = vand.u32 127, %v304_v18 }
   0x8   :  { %469 = vmatpush3.bf16.msra.mxu0 %v468_v7  ;;  %v489_v29 = vpack.c.bf16 %v126_v28, %v125_v27  ;;  %v492_v32 = vpack.c.bf16 %v128_v31, %v127_v30  ;;  %v129_v33 = vld [vmem:[%s737_s3 + $0x60] sm:$0xff]  ;;  %v130_v34 = vld [vmem:[%s737_s3 + $0x68] sm:$0xff]  ;;  %v131_v36 = vld [vmem:[%s737_s3 + $0x70] sm:$0xff] }
   0x9   :  { %470 = vmatprep.subr.bf16.mxu0 %v535_v0  ;;  %481 = vmatpush3.bf16.msra.mxu1 %v480_v15  ;;  %v495_v35 = vpack.c.bf16 %v130_v34, %v129_v33  ;;  %v132_v37 = vld [vmem:[%s737_s3 + $0x78] sm:$0xff]  ;;  %v211_v39 = vld [vmem:[%s739_s5] sm:$0xff]  ;;  %v212_v40 = vld [vmem:[%s739_s5 + $0x8] sm:$0xff]  ;;  %vm306_vm2 = vcmp.ge.s32.totalorder %v305_v20, 8 }
   0xa   :  { %482 = vmatprep.subr.bf16.mxu1 %v535_v0  ;;  %v498_v38 = vpack.c.bf16 %v132_v37, %v131_v36  ;;  %v213_v41 = vld [vmem:[%s739_s5 + $0x10] sm:$0xff]  ;;  %v501_v42 = vpack.c.bf16 %v212_v40, %v211_v39  ;;  %v214_v43 = vld [vmem:[%s739_s5 + $0x18] sm:$0xff]  ;;  %v215_v45 = vld [vmem:[%s739_s5 + $0x20] sm:$0xff] }
   0xb   :  { %v504_v44 = vpack.c.bf16 %v214_v43, %v213_v41  ;;  %v216_v46 = vld [vmem:[%s739_s5 + $0x28] sm:$0xff]  ;;  %v217_v48 = vld [vmem:[%s739_s5 + $0x30] sm:$0xff]  ;;  %v218_v49 = vld [vmem:[%s739_s5 + $0x38] sm:$0xff] }
   0xc   :  { %472 = vmatpush3.bf16.msra.mxu0 %v471_v16  ;;  %v507_v47 = vpack.c.bf16 %v216_v46, %v215_v45  ;;  %v510_v50 = vpack.c.bf16 %v218_v49, %v217_v48  ;;  %v219_v51 = vld [vmem:[%s739_s5 + $0x40] sm:$0xff]  ;;  %v220_v52 = vld [vmem:[%s739_s5 + $0x48] sm:$0xff]  ;;  %v221_v59 = vld [vmem:[%s739_s5 + $0x50] sm:$0xff] }
   0xd   :  { %473 = vmatprep.subr.bf16.mxu0 %v535_v0  ;;  %484 = vmatpush3.bf16.msra.mxu1 %v483_v21  ;;  %v513_v53 = vpack.c.bf16 %v220_v52, %v219_v51  ;;  %v328_v54 = vld [vmem:[%s740_s2] ss:$0 sm:$0xff]  ;;  %v222_v60 = vld [vmem:[%s739_s5 + $0x58] sm:$0xff]  ;;  %v224_v63 = vld [vmem:[%s739_s5 + $0x68] sm:$0xff] }
   0xe   :  { %485 = vmatprep.subr.bf16.mxu1 %v535_v0  ;;  %v516_v61 = vpack.c.bf16 %v222_v60, %v221_v59  ;;  %v223_v62 = vld [vmem:[%s739_s5 + $0x60] sm:$0xff]  ;;  %v225_v2 = vld [vmem:[%s739_s5 + $0x70] sm:$0xff]  ;;  %v226_v3 = vld [vmem:[%s739_s5 + $0x78] sm:$0xff] }
   0xf   :  { %v519_v1 = vpack.c.bf16 %v224_v63, %v223_v62  ;;  %v330_v5 = vld [vmem:[%s741_s4] ss:$0 sm:$0xff] }
  0x10   :  { %475 = vmatpush3.bf16.msra.mxu0 %v474_v22  ;;  %v331_v10 = vld [vmem:[%s742_s6] ss:$0 sm:$0xff] }
  0x11   :  { %500 = vmatprep.subr.bf16.mxu0 %v535_v0  ;;  %487 = vmatpush3.bf16.msra.mxu1 %v486_v25 }
  0x12   :  { %488 = vmatprep.subr.bf16.mxu1 %v535_v0 }
  0x13   :  { %392 = vmatmul.mubr.msk.f32.vlgmr.msra.gmra.mrb[0].mxu0 %vm42_vm1, %v26_v26 }
  0x14   :  { %461 = vmatprep.mubr.msk.f32.mxu0 %vm536_vm0, %v537_v4  ;;  %502 = vmatpush3.bf16.msra.mxu0 %v501_v42  ;;  %v522_v4 = vpack.c.bf16 %v226_v3, %v225_v2 }
  0x15   :  { %490 = vmatpush3.bf16.msra.mxu1 %v489_v29  ;;  %503 = vmatprep.subr.bf16.mxu0 %v535_v0 }
  0x16   :  { %491 = vmatprep.subr.bf16.mxu1 %v535_v0 }
  0x18   :  { %505 = vmatpush3.bf16.msra.mxu0 %v504_v44 }
  0x19   :  { %493 = vmatpush3.bf16.msra.mxu1 %v492_v32  ;;  %506 = vmatprep.subr.bf16.mxu0 %v535_v0 }
  0x1a   :  { %494 = vmatprep.subr.bf16.mxu1 %v535_v0 }
  0x1c   :  { %508 = vmatpush3.bf16.msra.mxu0 %v507_v47 }
  0x1d   :  { %496 = vmatpush3.bf16.msra.mxu1 %v495_v35  ;;  %509 = vmatprep.subr.bf16.mxu0 %v535_v0 }
  0x1e   :  { %497 = vmatprep.subr.bf16.mxu1 %v535_v0 }
  0x20   :  { %511 = vmatpush3.bf16.msra.mxu0 %v510_v50 }
  0x21   :  { %499 = vmatpush3.bf16.msra.mxu1 %v498_v38  ;;  %512 = vmatprep.subr.bf16.mxu0 %v535_v0 }
  0x24   :  { %514 = vmatpush3.bf16.msra.mxu0 %v513_v53 }
  0x25   :  { %515 = vmatprep.subr.bf16.mxu0 %v535_v0 }
  0x28   :  { %517 = vmatpush3.bf16.msra.mxu0 %v516_v61 }
  0x29   :  { %518 = vmatprep.subr.bf16.mxu0 %v535_v0 }
  0x2c   :  { %520 = vmatpush3.bf16.msra.mxu0 %v519_v1 }
  0x2d   :  { %521 = vmatprep.subr.bf16.mxu0 %v535_v0 }
  0x30   :  { %523 = vmatpush3.bf16.msra.mxu0 %v522_v4 }
  0xe6   :  { %v112_v55 = vpop.f32.mrb[0].mxu0 }
  0xe7   :  { %v113_v56 = vadd.f32 %v328_v54, %v112_v55  ;;  %v393_v57 = vpop.f32.mrb[1].mxu0 }
  0xe9   :  { %527 = vtanh.f32 %v113_v56 }
  0xf3   :  { %v528_v58 = vpop.eup %527 }
  0xf4   :  { %427 = vmatmul.mubr.f32.vlgmr.msra.gmra.mrb[0].mxu1 %v528_v58 }
 0x1c7   :  { %v206_v6 = vpop.f32.mrb[0].mxu1 }
 0x1c8   :  { %v207_v7 = vadd.f32 %v330_v5, %v206_v6  ;;  %v428_v8 = vpop.f32.mrb[1].mxu1 }
 0x1ca   :  { %529 = vtanh.f32 %v207_v7 }
 0x1d4   :  { %v530_v9 = vpop.eup %529 }
 0x1d5   :  { %462 = vmatmul.mubr.f32.vlgmr.msra.gmra.mrb[2].mxu0 %v530_v9 }
 0x2a8   :  { %v300_v11 = vpop.f32.mrb[2].mxu0 }
 0x2a9   :  { %v301_v12 = vadd.f32 %v331_v10, %v300_v11  ;;  %v463_v13 = vpop.f32.mrb[3].mxu0 }
 0x2ab   :  { %v308_v14 = vmin.f32 %v301_v12, 20.0  ;;  %vm307_vm4 = vcmp.gt.f32.partialorder %v301_v12, 20.0 }
 0x2ad   :  { %v309_v0 = vmul.f32 1.442695, %v308_v14 }
 0x2af   :  { %531 = vpow2.f32 %v309_v0 }
 0x2b9   :  { %v532_v15 = vpop.eup %531 }
 0x2ba   :  { %v311_v16 = vadd.f32 1.0, %v532_v15  ;;  %v314_v17 = vmul.f32 -0.5, %v532_v15  ;;  %v317_v21 = vand.u32 2147483647, %v532_v15 }
 0x2bc   :  { %533 = vlog2.f32 %v311_v16  ;;  %v315_v19 = vadd.f32 1.0, %v314_v17  ;;  %vm318_vm3 = vcmp.lt.f32.partialorder %v317_v21, 0.0004427343 }
 0x2be   :  { %v316_v24 = vmul.f32 %v532_v15, %v315_v19 }
 0x2c6   :  { %v534_v22 = vpop.eup %533 }
 0x2c7   :  { %v313_v23 = vmul.f32 0.6931472, %v534_v22 }
 0x2c9   :  { %v319_v25 = vsel %vm318_vm3, %v316_v24, %v313_v23 }
 0x2ca   :  { %v320_v26 = vsel %vm307_vm4, %v301_v12, %v319_v25 }
 0x2cb   :  { %v321_v27 = vsel %vm306_vm2, %v320_v26, %v301_v12 }
 0x2cc   :  { %323 = vst.msk [vmem:[%s743_s7] sm:$0xff] %vm322_vm5, %v321_v27 }

</bundles_post_ra>
